<compile_context>
chip_gen: v5e
topology: v5e:2x2
jax: 0.10.0
libtpu: 0.0.40
codegen_flags: <defaults>
</compile_context>

<pallas_src>
import math

import jax
import jax.numpy as jnp
from jax import lax
from jax.experimental import pallas as pl
from jax.experimental.pallas import tpu as pltpu

LANE = 128  # TPU lane width: outputs are written lane-dense, wrapper slices lane 0.


def _vmem_spec():
    return pl.BlockSpec(memory_space=pltpu.MemorySpace.VMEM)


# ---------------------------------------------------------------------------
# Fused Pallas kernel: conv+ReLU ("resnet") + cross-attn decode ("MMT._sample")
# ---------------------------------------------------------------------------
def _combine_kernel(patches_ref, conv_w_ref, conv_b_ref, q_ref, wk_ref, wv_ref,
                    wo_ref, seq_ref, lp_ref):
    f32 = jnp.float32
    bf16 = jnp.bfloat16

    # --- "resnet": conv3x3 s2 p1 as one aligned K-padded im2col matmul + ReLU ---
    feats = jnp.dot(patches_ref[...].astype(bf16), conv_w_ref[...],
                    preferred_element_type=f32)                       # (L, D)
    feats = jnp.maximum(feats + conv_b_ref[...], 0.0)
    feats_bf = feats.astype(bf16)

    # --- "MMT._sample": cross-attention of T learned queries over conv_feats ---
    k = jnp.dot(feats_bf, wk_ref[...], preferred_element_type=f32)    # (L, D)
    v = jnp.dot(feats_bf, wv_ref[...], preferred_element_type=f32)    # (L, D)

    # scores = q @ k^T via dot_general contracting dim 1 of BOTH operands:
    # no materialized transpose / XLU relayout of k before the MXU push.
    scores = lax.dot_general(
        q_ref[...], k.astype(bf16),
        dimension_numbers=(((1,), (1,)), ((), ())),
        preferred_element_type=f32)                                   # (T, L)
    scores = scores * (1.0 / math.sqrt(q_ref.shape[1]))

    # Softmax over L in f32; divide moved onto the EUP slot via approx reciprocal.
    m_s = jnp.max(scores, axis=-1, keepdims=True)
    p = jnp.exp(scores - m_s)
    attn = p * pl.reciprocal(jnp.sum(p, axis=-1, keepdims=True), approx=True)

    ctx = jnp.dot(attn.astype(bf16), v.astype(bf16),
                  preferred_element_type=f32)                         # (T, D)
    logits = jnp.dot(ctx.astype(bf16), wo_ref[...],
                     preferred_element_type=f32)                      # (T, V)

    # Greedy token + its logprob. For greedy decode the chosen token's log-softmax
    # is exactly max(logits) - logsumexp(logits); the (T, V) log-probs tensor is
    # never materialized. (Only valid because sampling is greedy/argmax.)
    m = jnp.max(logits, axis=-1, keepdims=True)                       # (T, 1)
    lse = jnp.log(jnp.sum(jnp.exp(logits - m), axis=-1, keepdims=True)) + m
    tok = jnp.argmax(logits, axis=-1).astype(jnp.int32)               # (T,)

    # Lane-dense writeback: broadcast over the 128-lane axis -> unmasked stores.
    seq_ref[...] = jnp.broadcast_to(tok[:, None], seq_ref.shape)
    lp_ref[...] = jnp.broadcast_to(m - lse, lp_ref.shape)


def combine_sample_pallas(patches, conv_w, conv_b, q_emb, wk, wv, wo):
    t_dec = q_emb.shape[0]
    return pl.pallas_call(
        _combine_kernel,
        out_shape=(
            jax.ShapeDtypeStruct((t_dec, LANE), jnp.int32),
            jax.ShapeDtypeStruct((t_dec, LANE), jnp.float32),
        ),
        in_specs=[_vmem_spec()] * 7,
        out_specs=(_vmem_spec(), _vmem_spec()),
        compiler_params=pltpu.CompilerParams(vmem_limit_bytes=32 * 1024 * 1024),
    )(patches, conv_w, conv_b, q_emb, wk, wv, wo)


# ---------------------------------------------------------------------------
# Glue: im2col (K padded to a multiple of 8), parameter setup, forward
# ---------------------------------------------------------------------------
def im2col_nhwc(x_nhwc, kh, kw, stride, pad, k_pad):
    n, h, w, c = x_nhwc.shape
    xp = jnp.pad(x_nhwc, ((0, 0), (pad, pad), (pad, pad), (0, 0)))
    ho = (h + 2 * pad - kh) // stride + 1
    wo = (w + 2 * pad - kw) // stride + 1
    cols = []
    for dy in range(kh):
        for dx in range(kw):
            cols.append(xp[:, dy:dy + stride * ho:stride,
                           dx:dx + stride * wo:stride, :])            # (N, Ho, Wo, C)
    patches = jnp.concatenate(cols, axis=-1)                          # (N, Ho, Wo, kh*kw*C)
    patches = patches.reshape(n * ho * wo, kh * kw * c)               # (L, 27)
    patches = jnp.pad(patches, ((0, 0), (0, k_pad - kh * kw * c)))    # (L, 32) aligned K
    return patches, ho, wo


def init_params(key, c_in=3, d_model=128, kh=3, kw=3, t_dec=8, vocab=128, k_pad=32):
    ks = jax.random.split(key, 6)
    scale = 0.05
    k_raw = kh * kw * c_in
    conv_w = scale * jax.random.normal(ks[0], (k_raw, d_model), jnp.float32)
    conv_w = jnp.pad(conv_w, ((0, k_pad - k_raw), (0, 0)))  # padded rows are inert
    return {
        "conv_w": conv_w.astype(jnp.bfloat16),
        "conv_b": scale * jax.random.normal(ks[1], (1, d_model), jnp.float32),
        "q_emb": (scale * jax.random.normal(ks[2], (t_dec, d_model),
                                            jnp.float32)).astype(jnp.bfloat16),
        "wk": (scale * jax.random.normal(ks[3], (d_model, d_model),
                                         jnp.float32)).astype(jnp.bfloat16),
        "wv": (scale * jax.random.normal(ks[4], (d_model, d_model),
                                         jnp.float32)).astype(jnp.bfloat16),
        "wo": (scale * jax.random.normal(ks[5], (d_model, vocab),
                                         jnp.float32)).astype(jnp.bfloat16),
    }


@jax.jit
def combine_net_forward(img_chw, params):
    """Equivalent of combineNet.forward for the tensor path.

    img_chw: (C, H, W) float32 (PyTorch NCHW convention, unbatched).
    Returns (seq, seqLogprobs) with shapes (1, T) int32 and (1, T) float32.
    """
    # img.unsqueeze(0) -> (1, C, H, W); convert to NHWC (channels lane-contiguous).
    x = img_chw[None]                                    # (1, C, H, W)
    x_nhwc = jnp.transpose(x, (0, 2, 3, 1))              # (1, H, W, C)

    # "resnet" input prep: im2col with K zero-padded 27 -> 32 (aligned MXU tile).
    k_pad = params["conv_w"].shape[0]
    patches, _, _ = im2col_nhwc(x_nhwc, 3, 3, stride=2, pad=1, k_pad=k_pad)

    # conv_masks: all positions valid -> sum == size -> None (matches reference).
    conv_masks = None
    del conv_masks

    # Fused: conv+ReLU -> conv_feats (stays in VMEM) -> cross-attn greedy decode.
    seq_pad, lp_pad = combine_sample_pallas(
        patches, params["conv_w"], params["conv_b"],
        params["q_emb"], params["wk"], params["wv"], params["wo"])

    # Slice lane 0 of the lane-dense (T, 128) outputs -> (1, T).
    seq = seq_pad[:, 0][None, :]
    seq_logprobs = lp_pad[:, 0][None, :]
    return seq, seq_logprobs


if __name__ == "__main__":
    key = jax.random.PRNGKey(0)
    k_img, k_par = jax.random.split(key)

    # Small shapes: img (3, 16, 16) -> conv feats (64, 128) -> decode T=8, vocab=128.
    img = jax.random.uniform(k_img, (3, 16, 16), jnp.float32)
    params = init_params(k_par, c_in=3, d_model=128, kh=3, kw=3,
                         t_dec=8, vocab=128, k_pad=32)

    seq, seq_logprobs = combine_net_forward(img, params)
    jax.block_until_ready((seq, seq_logprobs))

    assert seq.shape == (1, 8) and seq.dtype == jnp.int32
    assert seq_logprobs.shape == (1, 8) and seq_logprobs.dtype == jnp.float32
    print("KERNEL_OK")
</pallas_src>

<mosaic_0001>
module attributes {stable_mosaic.version = 11 : i64} {
  func.func @_combine_kernel(%arg0: memref<64x32xf32, #tpu.memory_space<vmem>>, %arg1: memref<32x128xbf16, #tpu.memory_space<vmem>>, %arg2: memref<1x128xf32, #tpu.memory_space<vmem>>, %arg3: memref<8x128xbf16, #tpu.memory_space<vmem>>, %arg4: memref<128x128xbf16, #tpu.memory_space<vmem>>, %arg5: memref<128x128xbf16, #tpu.memory_space<vmem>>, %arg6: memref<128x128xbf16, #tpu.memory_space<vmem>>, %arg7: memref<8x128xi32, #tpu.memory_space<vmem>>, %arg8: memref<8x128xf32, #tpu.memory_space<vmem>>) attributes {dimension_semantics = [], scalar_prefetch = 0 : i64, scratch_operands = 0 : i64, tpu.core_type = #tpu.core_type<tc>} {
    %c0 = arith.constant 0 : index
    %c0_0 = arith.constant 0 : index
    %0 = vector.load %arg0[%c0, %c0_0] : memref<64x32xf32, #tpu.memory_space<vmem>>, vector<64x32xf32>
    %1 = arith.truncf %0 : vector<64x32xf32> to vector<64x32xbf16>
    %c0_1 = arith.constant 0 : index
    %c0_2 = arith.constant 0 : index
    %2 = vector.load %arg1[%c0_1, %c0_2] : memref<32x128xbf16, #tpu.memory_space<vmem>>, vector<32x128xbf16>
    %cst = arith.constant dense<0.000000e+00> : vector<64x128xf32>
    %3 = tpu.matmul %1, %2, %cst {dimension_numbers = #tpu.dot_dimension_numbers<[1], [0], [0], [1], [0, 0, 1, 1], [], []>} : vector<64x32xbf16>, vector<32x128xbf16>, vector<64x128xf32> -> vector<64x128xf32>
    %c0_3 = arith.constant 0 : index
    %c0_4 = arith.constant 0 : index
    %4 = vector.load %arg2[%c0_3, %c0_4] : memref<1x128xf32, #tpu.memory_space<vmem>>, vector<1x128xf32>
    %5 = vector.broadcast %4 : vector<1x128xf32> to vector<64x128xf32>
    %6 = arith.addf %3, %5 : vector<64x128xf32>
    %cst_5 = arith.constant 0.000000e+00 : f32
    %7 = vector.broadcast %cst_5 : f32 to vector<64x128xf32>
    %8 = arith.maximumf %6, %7 : vector<64x128xf32>
    %9 = arith.truncf %8 : vector<64x128xf32> to vector<64x128xbf16>
    %c0_6 = arith.constant 0 : index
    %c0_7 = arith.constant 0 : index
    %10 = vector.load %arg4[%c0_6, %c0_7] : memref<128x128xbf16, #tpu.memory_space<vmem>>, vector<128x128xbf16>
    %cst_8 = arith.constant dense<0.000000e+00> : vector<64x128xf32>
    %11 = tpu.matmul %9, %10, %cst_8 {dimension_numbers = #tpu.dot_dimension_numbers<[1], [0], [0], [1], [0, 0, 1, 1], [], []>} : vector<64x128xbf16>, vector<128x128xbf16>, vector<64x128xf32> -> vector<64x128xf32>
    %c0_9 = arith.constant 0 : index
    %c0_10 = arith.constant 0 : index
    %12 = vector.load %arg5[%c0_9, %c0_10] : memref<128x128xbf16, #tpu.memory_space<vmem>>, vector<128x128xbf16>
    %cst_11 = arith.constant dense<0.000000e+00> : vector<64x128xf32>
    %13 = tpu.matmul %9, %12, %cst_11 {dimension_numbers = #tpu.dot_dimension_numbers<[1], [0], [0], [1], [0, 0, 1, 1], [], []>} : vector<64x128xbf16>, vector<128x128xbf16>, vector<64x128xf32> -> vector<64x128xf32>
    %c0_12 = arith.constant 0 : index
    %c0_13 = arith.constant 0 : index
    %14 = vector.load %arg3[%c0_12, %c0_13] : memref<8x128xbf16, #tpu.memory_space<vmem>>, vector<8x128xbf16>
    %15 = arith.truncf %11 : vector<64x128xf32> to vector<64x128xbf16>
    %cst_14 = arith.constant dense<0.000000e+00> : vector<8x64xf32>
    %16 = tpu.matmul %14, %15, %cst_14 {dimension_numbers = #tpu.dot_dimension_numbers<[1], [1], [0], [0], [0, 0, 1, 0], [], []>} : vector<8x128xbf16>, vector<64x128xbf16>, vector<8x64xf32> -> vector<8x64xf32>
    %cst_15 = arith.constant 0.0883883461 : f32
    %17 = vector.broadcast %cst_15 : f32 to vector<8x64xf32>
    %18 = arith.mulf %16, %17 : vector<8x64xf32>
    %cst_16 = arith.constant dense<0xFF800000> : vector<8xf32>
    %19 = vector.multi_reduction <maximumf>, %18, %cst_16 [1] : vector<8x64xf32> to vector<8xf32>
    %20 = vector.shape_cast %19 : vector<8xf32> to vector<8x1xf32>
    %21 = vector.broadcast %20 : vector<8x1xf32> to vector<8x64xf32>
    %22 = arith.subf %18, %21 : vector<8x64xf32>
    %23 = math.exp %22 : vector<8x64xf32>
    %cst_17 = arith.constant dense<0.000000e+00> : vector<8xf32>
    %24 = vector.multi_reduction <add>, %23, %cst_17 [1] : vector<8x64xf32> to vector<8xf32>
    %25 = vector.shape_cast %24 : vector<8xf32> to vector<8x1xf32>
    %26 = tpu.reciprocal %25 {approx = true} : vector<8x1xf32> -> vector<8x1xf32>
    %27 = vector.broadcast %26 : vector<8x1xf32> to vector<8x64xf32>
    %28 = arith.mulf %23, %27 : vector<8x64xf32>
    %29 = arith.truncf %28 : vector<8x64xf32> to vector<8x64xbf16>
    %30 = arith.truncf %13 : vector<64x128xf32> to vector<64x128xbf16>
    %cst_18 = arith.constant dense<0.000000e+00> : vector<8x128xf32>
    %31 = tpu.matmul %29, %30, %cst_18 {dimension_numbers = #tpu.dot_dimension_numbers<[1], [0], [0], [1], [0, 0, 1, 1], [], []>} : vector<8x64xbf16>, vector<64x128xbf16>, vector<8x128xf32> -> vector<8x128xf32>
    %32 = arith.truncf %31 : vector<8x128xf32> to vector<8x128xbf16>
    %c0_19 = arith.constant 0 : index
    %c0_20 = arith.constant 0 : index
    %33 = vector.load %arg6[%c0_19, %c0_20] : memref<128x128xbf16, #tpu.memory_space<vmem>>, vector<128x128xbf16>
    %cst_21 = arith.constant dense<0.000000e+00> : vector<8x128xf32>
    %34 = tpu.matmul %32, %33, %cst_21 {dimension_numbers = #tpu.dot_dimension_numbers<[1], [0], [0], [1], [0, 0, 1, 1], [], []>} : vector<8x128xbf16>, vector<128x128xbf16>, vector<8x128xf32> -> vector<8x128xf32>
    %cst_22 = arith.constant dense<0xFF800000> : vector<8xf32>
    %35 = vector.multi_reduction <maximumf>, %34, %cst_22 [1] : vector<8x128xf32> to vector<8xf32>
    %36 = vector.shape_cast %35 : vector<8xf32> to vector<8x1xf32>
    %37 = vector.broadcast %36 : vector<8x1xf32> to vector<8x128xf32>
    %38 = arith.subf %34, %37 : vector<8x128xf32>
    %39 = math.exp %38 : vector<8x128xf32>
    %cst_23 = arith.constant dense<0.000000e+00> : vector<8xf32>
    %40 = vector.multi_reduction <add>, %39, %cst_23 [1] : vector<8x128xf32> to vector<8xf32>
    %41 = vector.shape_cast %40 : vector<8xf32> to vector<8x1xf32>
    %42 = math.log %41 : vector<8x1xf32>
    %43 = arith.addf %42, %36 : vector<8x1xf32>
    %44 = tpu.reduce_index %34 {axis = 1 : i32, kind = #tpu.reduction_kind<arg_max>} : vector<8x128xf32> -> vector<8xi32>
    %45 = vector.shape_cast %44 : vector<8xi32> to vector<8x1xi32>
    %46 = vector.shape_cast %45 : vector<8x1xi32> to vector<8x1xi32>
    %47 = vector.broadcast %46 : vector<8x1xi32> to vector<8x128xi32>
    %c0_24 = arith.constant 0 : index
    %c0_25 = arith.constant 0 : index
    %48 = vector.load %arg7[%c0_24, %c0_25] : memref<8x128xi32, #tpu.memory_space<vmem>>, vector<8x128xi32>
    tpu.vector_store %arg7[%c0_24, %c0_25], %47 {strides = array<i32>} : memref<8x128xi32, #tpu.memory_space<vmem>>, vector<8x128xi32>,
    %49 = arith.subf %36, %43 : vector<8x1xf32>
    %50 = vector.shape_cast %49 : vector<8x1xf32> to vector<8x1xf32>
    %51 = vector.broadcast %50 : vector<8x1xf32> to vector<8x128xf32>
    %c0_26 = arith.constant 0 : index
    %c0_27 = arith.constant 0 : index
    %52 = vector.load %arg8[%c0_26, %c0_27] : memref<8x128xf32, #tpu.memory_space<vmem>>, vector<8x128xf32>
    tpu.vector_store %arg8[%c0_26, %c0_27], %51 {strides = array<i32>} : memref<8x128xf32, #tpu.memory_space<vmem>>, vector<8x128xf32>,
    return
  }
}

</mosaic_0001>

<bundles_post_ra>
// kernel: combine_net_forward.1
= control target key start
LH: loop header
LB: loop body
LE: loop exit
PB: predicated region body
PF: predicated region fallthrough
CT: control target
= control target key end

     0   :  { %vm61_vm0 = vcmask 261120   ;;  %vm320_vm1 = vcmask 523264   ;;  %s764_s1 = inlined_call_operand.vmem [shape: bf16[32,128], index: 1, kind: input, shape index: {}]   ;;  %s765_s0 = inlined_call_operand.vmem [shape: f32[64,32], index: 0, kind: input, shape index: {}]   ;;  %s766_s2 = inlined_call_operand.vmem [shape: f32[1,128], index: 2, kind: input, shape index: {}]   ;;  %s767_s4 = inlined_call_operand.vmem [shape: bf16[128,128], index: 4, kind: input, shape index: {}]   ;;  %s768_s5 = inlined_call_operand.vmem [shape: bf16[128,128], index: 5, kind: input, shape index: {}]   ;;  %s769_s3 = inlined_call_operand.vmem [shape: bf16[8,128], index: 3, kind: input, shape index: {}]   ;;  %s770_s6 = inlined_call_operand.vmem [shape: bf16[128,128], index: 6, kind: input, shape index: {}]   ;;  %s771_s7 = inlined_call_operand.vmem [shape: s32[8,128], index: 7, kind: output, shape index: {0}]   ;;  %s772_s8 = inlined_call_operand.vmem [shape: f32[8,128], index: 8, kind: output, shape index: {1}]  }
   0x1   :  { %v564_v0 = vld [vmem:[%s764_s1 + $0x8] sm:$0xff]  ;;  %v563_v1 = vld [vmem:[%s764_s1] sm:$0xff]  ;;  %v31_v5 = vld [vmem:[%s765_s0 + $0x10] sm:$0xff] }
   0x2   :  { %80 = vmatpush.bf16.msra.mxu0 %v564_v0  ;;  %v29_v2 = vld [vmem:[%s765_s0] sm:$0xff]  ;;  %v30_v3 = vld [vmem:[%s765_s0 + $0x8] sm:$0xff]  ;;  %v32_v6 = vld [vmem:[%s765_s0 + $0x18] sm:$0xff] }
   0x3   :  { %v37_v4 = vpack.c.bf16 %v30_v3, %v29_v2  ;;  %v38_v7 = vpack.c.bf16 %v32_v6, %v31_v5  ;;  %v572_v8 = vld [vmem:[%s767_s4 + $0x38] sm:$0xff]  ;;  %v571_v10 = vld [vmem:[%s767_s4 + $0x30] sm:$0xff]  ;;  %v570_v12 = vld [vmem:[%s767_s4 + $0x28] sm:$0xff] }
   0x4   :  { %v580_v9 = vld [vmem:[%s768_s5 + $0x38] sm:$0xff]  ;;  %179 = vmatpush.bf16.msra.mxu1 %v572_v8  ;;  %v579_v11 = vld [vmem:[%s768_s5 + $0x30] sm:$0xff]  ;;  %v578_v13 = vld [vmem:[%s768_s5 + $0x28] sm:$0xff] }
   0x5   :  { %272 = vmatpush.bf16.msra.mxu2 %v580_v9  ;;  %v33_v14 = vld [vmem:[%s765_s0 + $0x20] sm:$0xff]  ;;  %v34_v15 = vld [vmem:[%s765_s0 + $0x28] sm:$0xff]  ;;  %v35_v19 = vld [vmem:[%s765_s0 + $0x30] sm:$0xff] }
   0x6   :  { %81 = vmatpush.bf16.msra.mxu0 %v563_v1  ;;  %v569_v16 = vld [vmem:[%s767_s4 + $0x20] sm:$0xff]  ;;  %v39_v18 = vpack.c.bf16 %v34_v15, %v33_v14  ;;  %v36_v20 = vld [vmem:[%s765_s0 + $0x38] sm:$0xff]  ;;  %v567_v24 = vld [vmem:[%s767_s4 + $0x10] sm:$0xff] }
   0x7   :  { %v577_v17 = vld [vmem:[%s768_s5 + $0x20] sm:$0xff]  ;;  %v40_v21 = vpack.c.bf16 %v36_v20, %v35_v19  ;;  %v568_v22 = vld [vmem:[%s767_s4 + $0x18] sm:$0xff]  ;;  %v575_v25 = vld [vmem:[%s768_s5 + $0x10] sm:$0xff] }
   0x8   :  { %180 = vmatpush.bf16.msra.mxu1 %v571_v10  ;;  %v576_v23 = vld [vmem:[%s768_s5 + $0x18] sm:$0xff]  ;;  %v566_v26 = vld [vmem:[%s767_s4 + $0x8] sm:$0xff]  ;;  %v565_v28 = vld [vmem:[%s767_s4] sm:$0xff] }
   0x9   :  { %462 = vmatmul.msk.bf16.vlgmr.msra.gmra.mxu0 %vm61_vm0, %v37_v4  ;;  %273 = vmatpush.bf16.msra.mxu2 %v579_v11  ;;  %v574_v27 = vld [vmem:[%s768_s5 + $0x8] sm:$0xff]  ;;  %v573_v29 = vld [vmem:[%s768_s5] sm:$0xff] }
   0xa   :  { %v589_v31 = vld [vmem:[%s766_s2] ss:$0 sm:$0xff] }
   0xc   :  { %181 = vmatpush.bf16.msra.mxu1 %v570_v12 }
   0xd   :  { %274 = vmatpush.bf16.msra.mxu2 %v578_v13 }
  0x10   :  { %182 = vmatpush.bf16.msra.mxu1 %v569_v16 }
  0x11   :  { %275 = vmatpush.bf16.msra.mxu2 %v577_v17  ;;  %v301_v17 = vld [vmem:[%s769_s3] sm:$0xf] }
  0x14   :  { %183 = vmatpush.bf16.msra.mxu1 %v568_v22 }
  0x15   :  { %276 = vmatpush.bf16.msra.mxu2 %v576_v23 }
  0x18   :  { %184 = vmatpush.bf16.msra.mxu1 %v567_v24 }
  0x19   :  { %463 = vmatmul.msk.bf16.gmra.mxu0 %vm61_vm0, %v38_v7  ;;  %277 = vmatpush.bf16.msra.mxu2 %v575_v25 }
  0x1c   :  { %185 = vmatpush.bf16.msra.mxu1 %v566_v26 }
  0x1d   :  { %278 = vmatpush.bf16.msra.mxu2 %v574_v27 }
  0x20   :  { %186 = vmatpush.bf16.msra.mxu1 %v565_v28 }
  0x21   :  { %279 = vmatpush.bf16.msra.mxu2 %v573_v29  ;;  %v588_v29 = vld [vmem:[%s770_s6 + $0x38] sm:$0xff] }
  0x22   :  { %418 = vmatpush.bf16.msrb.mxu0 %v588_v29 }
  0x29   :  { %464 = vmatmul.msk.bf16.gmra.mxu0 %vm61_vm0, %v39_v18 }
  0x39   :  { %465 = vmatmul.msk.bf16.gmra.mxu0 %vm61_vm0, %v40_v21 }
  0x86   :  { %v83_v30 = vpop.f32.mrf.mxu0 }
  0x87   :  { %v84_v32 = vadd.f32 %v589_v31, %v83_v30  ;;  %v587_v30 = vld [vmem:[%s770_s6 + $0x30] sm:$0xff] }
  0x88   :  { %419 = vmatpush.bf16.msrb.mxu0 %v587_v30 }
  0x89   :  { %v103_v35 = vmax.f32 %v84_v32, 0.0  ;;  %v585_v32 = vld [vmem:[%s770_s6 + $0x20] sm:$0xff] }
  0x8e   :  { %v85_v33 = vpop.f32.mrf.mxu0 }
  0x8f   :  { %v86_v34 = vadd.f32 %v589_v31, %v85_v33  ;;  %v584_v33 = vld [vmem:[%s770_s6 + $0x18] sm:$0xff] }
  0x91   :  { %v104_v36 = vmax.f32 %v86_v34, 0.0  ;;  %v583_v34 = vld [vmem:[%s770_s6 + $0x10] sm:$0xff] }
  0x93   :  { %v111_v37 = vpack.c.bf16 %v104_v36, %v103_v35  ;;  %v582_v36 = vld [vmem:[%s770_s6 + $0x8] sm:$0xff] }
  0x95   :  { %187 = vmatmul.bf16.vlgmr.msra.gmra.mxu1 %v111_v37  ;;  %280 = vmatmul.bf16.vlgmr.msra.gmra.mxu2 %v111_v37  ;;  %v581_v37 = vld [vmem:[%s770_s6] sm:$0xff] }
  0x96   :  { %v88_v38 = vpop.f32.mrf.mxu0 }
  0x97   :  { %v89_v39 = vadd.f32 %v589_v31, %v88_v38 }
  0x99   :  { %v105_v42 = vmax.f32 %v89_v39, 0.0 }
  0x9e   :  { %v90_v40 = vpop.f32.mrf.mxu0 }
  0x9f   :  { %v91_v41 = vadd.f32 %v589_v31, %v90_v40 }
  0xa1   :  { %v106_v43 = vmax.f32 %v91_v41, 0.0 }
  0xa3   :  { %v112_v44 = vpack.c.bf16 %v106_v43, %v105_v42 }
  0xa5   :  { %192 = vmatmul.bf16.gmra.mxu1 %v112_v44  ;;  %285 = vmatmul.bf16.gmra.mxu2 %v112_v44 }
  0xa6   :  { %v93_v45 = vpop.f32.mrf.mxu0 }
  0xa7   :  { %v94_v46 = vadd.f32 %v589_v31, %v93_v45 }
  0xa9   :  { %v107_v49 = vmax.f32 %v94_v46, 0.0 }
  0xae   :  { %v95_v47 = vpop.f32.mrf.mxu0 }
  0xaf   :  { %v96_v48 = vadd.f32 %v589_v31, %v95_v47 }
  0xb1   :  { %v108_v50 = vmax.f32 %v96_v48, 0.0 }
  0xb3   :  { %v113_v51 = vpack.c.bf16 %v108_v50, %v107_v49 }
  0xb5   :  { %197 = vmatmul.bf16.gmra.mxu1 %v113_v51  ;;  %290 = vmatmul.bf16.gmra.mxu2 %v113_v51 }
  0xb6   :  { %v98_v52 = vpop.f32.mrf.mxu0 }
  0xb7   :  { %v99_v53 = vadd.f32 %v589_v31, %v98_v52 }
  0xb9   :  { %v109_v56 = vmax.f32 %v99_v53, 0.0 }
  0xbe   :  { %v100_v54 = vpop.f32.mrf.mxu0 }
  0xbf   :  { %v101_v55 = vadd.f32 %v589_v31, %v100_v54  ;;  %v586_v31 = vld [vmem:[%s770_s6 + $0x28] sm:$0xff] }
  0xc0   :  { %420 = vmatpush.bf16.msrb.mxu0 %v586_v31 }
  0xc1   :  { %v110_v57 = vmax.f32 %v101_v55, 0.0 }
  0xc3   :  { %v114_v58 = vpack.c.bf16 %v110_v57, %v109_v56 }
  0xc4   :  { %421 = vmatpush.bf16.msrb.mxu0 %v585_v32 }
  0xc5   :  { %202 = vmatmul.bf16.gmra.mxu1 %v114_v58  ;;  %295 = vmatmul.bf16.gmra.mxu2 %v114_v58 }
  0xc8   :  { %422 = vmatpush.bf16.msrb.mxu0 %v584_v33 }
  0xcc   :  { %423 = vmatpush.bf16.msrb.mxu0 %v583_v34 }
  0xd0   :  { %424 = vmatpush.bf16.msrb.mxu0 %v582_v36 }
  0xd4   :  { %425 = vmatpush.bf16.msrb.mxu0 %v581_v37 }
 0x112   :  { %v188_v59 = vpop.f32.mrf.mxu1 }
 0x118   :  { %v281_v61 = vpop.f32.mrf.mxu2 }
 0x11a   :  { %v190_v60 = vpop.f32.mrf.mxu1 }
 0x11b   :  { %v302_v62 = vpack.c.bf16 %v190_v60, %v188_v59 }
 0x120   :  { %v283_v0 = vpop.f32.mrf.mxu2 }
 0x121   :  { %v333_v19 = vpack.c.bf16 %v283_v0, %v281_v61 }
 0x122   :  { %v193_v63 = vpop.f32.mrf.mxu1 }
 0x128   :  { %v286_v2 = vpop.f32.mrf.mxu2 }
 0x12a   :  { %v195_v1 = vpop.f32.mrf.mxu1 }
 0x12b   :  { %v303_v13 = vpack.c.bf16 %v195_v1, %v193_v63 }
 0x130   :  { %v288_v4 = vpop.f32.mrf.mxu2 }
 0x131   :  { %v334_v18 = vpack.c.bf16 %v288_v4, %v286_v2 }
 0x132   :  { %v198_v3 = vpop.f32.mrf.mxu1 }
 0x138   :  { %v291_v7 = vpop.f32.mrf.mxu2 }
 0x13a   :  { %v200_v5 = vpop.f32.mrf.mxu1 }
 0x13b   :  { %v304_v11 = vpack.c.bf16 %v200_v5, %v198_v3 }
 0x140   :  { %v293_v10 = vpop.f32.mrf.mxu2 }
 0x141   :  { %v335_v16 = vpack.c.bf16 %v293_v10, %v291_v7 }
 0x142   :  { %v203_v6 = vpop.f32.mrf.mxu1 }
 0x148   :  { %v296_v12 = vpop.f32.mrf.mxu2 }
 0x14a   :  { %v205_v8 = vpop.f32.mrf.mxu1 }
 0x14b   :  { %v305_v9 = vpack.c.bf16 %v205_v8, %v203_v6 }
 0x14d   :  { %310 = vmatpush.bf16.xpose.msra.mxu3 %v305_v9 }
 0x150   :  { %v298_v14 = vpop.f32.mrf.mxu2 }
 0x151   :  { %v336_v15 = vpack.c.bf16 %v298_v14, %v296_v12 }
 0x155   :  { %311 = vmatpush.bf16.xpose.msra.mxu3 %v304_v11 }
 0x15d   :  { %312 = vmatpush.bf16.xpose.msra.mxu3 %v303_v13 }
 0x165   :  { %313 = vmatpush.bf16.xpose.msra.mxu3 %v302_v62 }
 0x16c   :  { %314 = vmatmul.bf16.vlgmr.msra.gmra.mxu3 %v301_v17 }
 0x16d   :  { %344 = vmatpush.bf16.msrb.mxu3 %v336_v15 }
 0x171   :  { %345 = vmatpush.bf16.msrb.mxu3 %v335_v16 }
 0x175   :  { %346 = vmatpush.bf16.msrb.mxu3 %v334_v18 }
 0x179   :  { %347 = vmatpush.bf16.msrb.mxu3 %v333_v19 }
 0x1ef   :  { %v315_v20 = vpop.f32.mrf.mxu3 }
 0x1f0   :  { %v319_v21 = vmul.f32 0.088388346, %v315_v20 }
 0x1f2   :  { %v321_v22 = vsel %vm320_vm1, %v319_v21, -inf }
 0x1f3   :  { %322 = vmax.xlane.f32.xlu0 %v321_v22 }
 0x1f7   :  { %v317_v23 = vpop.f32.mrf.mxu3 }
 0x266   :  { %v323_v24 = vpop.xlane.xlu0 %322 }
 0x267   :  { %v324_v25 = vsub.f32 %v319_v21, %v323_v24 }
 0x269   :  { %v325_v26 = vmul.f32 1.442695, %v324_v25 }
 0x26b   :  { %590 = vpow2.f32 %v325_v26 }
 0x271   :  { %v591_v27 = vpop.eup %590 }
 0x272   :  { %v327_v28 = vsel %vm320_vm1, %v591_v27, 0.0 }
 0x273   :  { %328 = vadd.xlane.f32.xlu0 %v327_v28 }
 0x2e6   :  { %v329_v35 = vpop.xlane.xlu0 %328 }
 0x2e7   :  { %592 = vrcp.f32 %v329_v35 }
 0x2ed   :  { %v593_v38 = vpop.eup %592 }
 0x2ee   :  { %v331_v39 = vmul.f32 %v593_v38, %v591_v27 }
 0x2f0   :  { %v332_v40 = vpack.c.bf16 %v331_v39, %v331_v39 }
 0x2f2   :  { %530 = vmatmul.msk.bf16.vlgmr.msrb.gmra.mxu3 %vm320_vm1, %v332_v40 }
 0x375   :  { %v349_v41 = vpop.f32.mrf.mxu3 }
 0x376   :  { %v353_v42 = vpack.c.bf16 %v349_v41, %v349_v41 }
 0x378   :  { %426 = vmatmul.bf16.vlgmr.msrb.gmra.mxu0 %v353_v42 }
 0x37d   :  { %v351_v43 = vpop.f32.mrf.mxu3 }
 0x3f5   :  { %v427_v44 = vpop.f32.mrf.mxu0 }
 0x3f6   :  { %441 = vmax.index.xlane.f32.xlu2 %v427_v44  ;;  %431 = vmax.xlane.f32.xlu1 %v427_v44 }
 0x3fd   :  { %v429_v45 = vpop.f32.mrf.mxu0 }
 0x469   :  { %v442_v46 = vpop.xlane.xlu2 %441  ;;  %v432_v47 = vpop.xlane.xlu1 %431 }
 0x46a   :  { %443 = vst [vmem:[%s771_s7] sm:$0xff] %v442_v46  ;;  %v433_v48 = vsub.f32 %v427_v44, %v432_v47 }
 0x46c   :  { %v434_v49 = vmul.f32 1.442695, %v433_v48 }
 0x46e   :  { %594 = vpow2.f32 %v434_v49 }
 0x474   :  { %v595_v50 = vpop.eup %594 }
 0x475   :  { %436 = vadd.xlane.f32.xlu1 %v595_v50 }
 0x4e8   :  { %v437_v51 = vpop.xlane.xlu1 %436 }
 0x4e9   :  { %596 = vlog2.f32 %v437_v51 }
 0x4ef   :  { %v597_v52 = vpop.eup %596 }
 0x4f0   :  { %v439_v53 = vmul.f32 0.6931472, %v597_v52 }
 0x4f2   :  { %v440_v54 = vadd.f32 %v439_v53, %v432_v47 }
 0x4f4   :  { %v444_v55 = vsub.f32 %v432_v47, %v440_v54 }
 0x4f6   :  { %445 = vst [vmem:[%s772_s8] sm:$0xff] %v444_v55 }

</bundles_post_ra>
